<compile_context>
chip_gen: v6e
topology: v6e:2x2x1
jax: 0.10.0
libtpu: 0.0.40
codegen_flags: <defaults>
</compile_context>

<pallas_src>
import jax
import jax.numpy as jnp
from jax.experimental import pallas as pl
from jax.experimental.pallas import tpu as pltpu


# ----------------------------------------------------------------------------
# Kernel: fused encoder + decoder, 6 x (matmul + bias + relu)
# ----------------------------------------------------------------------------
def _ae_kernel(x_ref,
               w1_ref, b1_ref, w2_ref, b2_ref, w3_ref, b3_ref,
               w4_ref, b4_ref, w5_ref, b5_ref, w6_ref, b6_ref,
               out_ref):
    def dense_relu(h, w_ref, b_ref):
        # MXU matmul in the weight dtype (f32 or bf16), f32 accumulation.
        y = jnp.dot(h.astype(w_ref.dtype), w_ref[...],
                    preferred_element_type=jnp.float32)
        y = y + b_ref[...].astype(jnp.float32)    # bias [1, out] broadcasts
        return jnp.maximum(y, 0.0)

    h = x_ref[...]
    for w_ref, b_ref in ((w1_ref, b1_ref), (w2_ref, b2_ref), (w3_ref, b3_ref),
                         (w4_ref, b4_ref), (w5_ref, b5_ref), (w6_ref, b6_ref)):
        h = dense_relu(h, w_ref, b_ref)
    out_ref[...] = h.astype(out_ref.dtype)


# ----------------------------------------------------------------------------
# Helpers
# ----------------------------------------------------------------------------
def _round_up(x, m):
    return ((x + m - 1) // m) * m


def _cdiv(a, b):
    return -(-a // b)


def _sublane_align(*dtypes):
    """Min row-tile alignment: 8 for f32, 16 for bf16/f16, 32 for int8."""
    a = 8
    for dt in dtypes:
        itemsize = jnp.dtype(dt).itemsize
        a = max(a, 8 * max(1, 4 // itemsize))
    return a


def _tensorcores_per_chip():
    """v4/v5p/v7x expose 2 TensorCores per chip; v5e/v6e have 1."""
    try:
        kind = jax.devices()[0].device_kind.lower()
    except Exception:
        return 1
    if ("v7" in kind) or ("7x" in kind) or ("v4" in kind) or ("v5p" in kind):
        return 2
    return 1


def _choose_block_b(B, *, align, cap, n_cores):
    """Balanced batch tiles: multiple of `align`, <= cap rows, and on 2-TC
    chips an even number of tiles so both cores get work."""
    b = _round_up(B, align)
    if n_cores <= 1:
        if b <= cap:
            return b                                   # one big tile, 1 step
        n_tiles = _cdiv(b, cap)
        return _round_up(_cdiv(b, n_tiles), align)     # balanced tiles
    # 2-TC chip: split across cores when the batch is big enough.
    if b <= n_cores * align:
        return b
    n_tiles = max(n_cores, _cdiv(b, cap))
    n_tiles = _round_up(n_tiles, n_cores)
    return _round_up(_cdiv(b, n_tiles), align)


# ----------------------------------------------------------------------------
# One-time parameter preparation (pad + cast outside the forward call)
# ----------------------------------------------------------------------------
def prepare_params(params, *, compute_dtype=jnp.float32):
    """params: list of (W [in,out], b [out]) for the 6 layers.
    Layer-1 keeps its true in-dim (matches x last dim, no x padding needed);
    layer-6 keeps its true out-dim (matches the output last dim).  All
    intermediate widths are zero-padded to multiples of 128 — exact under
    bias-add + ReLU since padded weight rows/cols and bias lanes are 0."""
    n = len(params)
    prepared = []
    for idx, (w, b) in enumerate(params):
        in_f, out_f = w.shape
        in_p = in_f if idx == 0 else _round_up(in_f, 128)
        out_p = out_f if idx == n - 1 else _round_up(out_f, 128)
        w_p = (jnp.zeros((in_p, out_p), compute_dtype)
               .at[:in_f, :out_f].set(w.astype(compute_dtype)))
        b_p = (jnp.zeros((1, out_p), jnp.float32)
               .at[0, :out_f].set(b.astype(jnp.float32)))
        prepared.append((w_p, b_p))
    return prepared


# ----------------------------------------------------------------------------
# Forward wrapper
# ----------------------------------------------------------------------------
def ae_forward(x, prepared_params, *, out_dtype=None, block_b=None,
               block_cap=2048):
    """x: [B, D].  prepared_params: output of prepare_params()."""
    B, D = x.shape
    out_dtype = x.dtype if out_dtype is None else jnp.dtype(out_dtype)

    align = _sublane_align(x.dtype, out_dtype)
    n_cores = _tensorcores_per_chip()
    if block_b is None:
        block_b = _choose_block_b(B, align=align, cap=block_cap,
                                  n_cores=n_cores)
    else:
        block_b = _round_up(block_b, align)
    B_pad = _round_up(B, block_b)
    grid = B_pad // block_b

    # Row-only padding, and only when B isn't a tile multiple (rows are
    # independent, padded rows are discarded on the way out).
    x_in = x if B_pad == B else jnp.zeros((B_pad, D), x.dtype).at[:B].set(x)

    # Input block uses the full-extent last dim (D == full array dim), so no
    # feature padding / output slicing is needed.
    in_specs = [pl.BlockSpec((block_b, D), lambda i: (i, 0))]
    flat_args = [x_in]
    const_bytes = 0
    flops = 0
    max_width = D
    for (w_p, b_p) in prepared_params:
        in_p, out_p = w_p.shape
        # Grid-invariant operands: constant index_map, full-array blocks.
        in_specs.append(pl.BlockSpec(w_p.shape, lambda i: (0, 0)))
        in_specs.append(pl.BlockSpec(b_p.shape, lambda i: (0, 0)))
        flat_args.extend([w_p, b_p])
        const_bytes += (w_p.size * w_p.dtype.itemsize
                        + b_p.size * b_p.dtype.itemsize)
        flops += 2 * B_pad * in_p * out_p
        max_width = max(max_width, out_p)

    out_spec = pl.BlockSpec((block_b, D), lambda i: (i, 0))

    io_bytes = (B_pad * D * x.dtype.itemsize
                + B_pad * D * out_dtype.itemsize)
    cost = pl.CostEstimate(flops=int(flops), transcendentals=0,
                           bytes_accessed=int(io_bytes + const_bytes))

    # Size VMEM to actual need (resident weights + double-buffered x/out tiles
    # + activation headroom) instead of the full physical VMEM.
    vmem_need = (2 * const_bytes
                 + 2 * block_b * D * x.dtype.itemsize
                 + 2 * block_b * D * out_dtype.itemsize
                 + 4 * block_b * max_width * 4)
    vmem_limit = int(min(32 * 1024 * 1024,
                         max(8 * 1024 * 1024, int(vmem_need * 1.5))))

    out = pl.pallas_call(
        _ae_kernel,
        out_shape=jax.ShapeDtypeStruct((B_pad, D), out_dtype),
        grid_spec=pltpu.PrefetchScalarGridSpec(
            num_scalar_prefetch=0,
            grid=(grid,),
            in_specs=in_specs,
            out_specs=out_spec,
        ),
        compiler_params=pltpu.CompilerParams(
            dimension_semantics=("parallel",),
            vmem_limit_bytes=vmem_limit,
        ),
        cost_estimate=cost,
    )(*flat_args)

    return out if B_pad == B else out[:B]


# ----------------------------------------------------------------------------
# Parameter construction (mimics PyTorch nn.Linear defaults) + pure-JAX ref
# ----------------------------------------------------------------------------
def init_linear(key, in_f, out_f):
    kw, kb = jax.random.split(key)
    bound = 1.0 / jnp.sqrt(jnp.float32(in_f))
    # stored as [in, out] (transpose of PyTorch's [out, in])
    w = jax.random.uniform(kw, (in_f, out_f), jnp.float32, -bound, bound)
    b = jax.random.uniform(kb, (out_f,), jnp.float32, -bound, bound)
    return w, b


def make_ae_params(key, input_shape):
    d = input_shape
    dims = [
        (d, int(d * (2 / 3))),
        (int(d * (2 / 3)), int(d * (1 / 3))),
        (int(d * (1 / 3)), int(d * (1 / 6))),
        (int(d * (1 / 6)), int(d * (1 / 3))),
        (int(d * (1 / 3)), int(d * (2 / 3))),
        (int(d * (2 / 3)), d),
    ]
    keys = jax.random.split(key, len(dims))
    return [init_linear(k, i, o) for k, (i, o) in zip(keys, dims)]


def ae_reference(x, params):
    h = x
    for (w, b) in params:
        h = jnp.maximum(h @ w + b, 0.0)
    return h


# ----------------------------------------------------------------------------
# Self-test
# ----------------------------------------------------------------------------
if __name__ == "__main__":
    key = jax.random.PRNGKey(0)
    k_x, k_p = jax.random.split(key)

    input_shape = 96   # D; hidden dims become 64, 32, 16, 32, 64, 96
    batch = 8

    x = jax.random.normal(k_x, (batch, input_shape), jnp.float32)
    params = make_ae_params(k_p, input_shape)
    ref = ae_reference(x, params)

    # --- f32 path: tight tolerance ------------------------------------------
    prep_f32 = prepare_params(params, compute_dtype=jnp.float32)
    out_f32 = jax.block_until_ready(ae_forward(x, prep_f32))
    assert out_f32.shape == (batch, input_shape)
    assert jnp.allclose(out_f32, ref, atol=1e-5, rtol=1e-5), "f32 mismatch"

    # --- bf16 streaming path (bf16 x/out/weights, f32 accumulation) ----------
    prep_bf16 = prepare_params(params, compute_dtype=jnp.bfloat16)
    out_bf16 = jax.block_until_ready(
        ae_forward(x.astype(jnp.bfloat16), prep_bf16, out_dtype=jnp.bfloat16))
    assert out_bf16.shape == (batch, input_shape)
    assert jnp.allclose(out_bf16.astype(jnp.float32), ref,
                        atol=7.5e-2, rtol=7.5e-2), "bf16 mismatch"

    # --- multi-step grid + ragged batch (row padding path) -------------------
    batch2 = 200
    x2 = jax.random.normal(k_x, (batch2, input_shape), jnp.float32)
    ref2 = ae_reference(x2, params)
    out2 = jax.block_until_ready(ae_forward(x2, prep_f32, block_b=64))
    assert out2.shape == (batch2, input_shape)
    assert jnp.allclose(out2, ref2, atol=1e-4, rtol=1e-4), "tiled mismatch"

    print("KERNEL_OK")
</pallas_src>

<mosaic_0001>
module attributes {stable_mosaic.version = 11 : i64} {
  func.func @_ae_kernel(%arg0: i32, %arg1: memref<8x96xf32, #tpu.memory_space<vmem>>, %arg2: memref<96x128xf32, #tpu.memory_space<vmem>>, %arg3: memref<1x128xf32, #tpu.memory_space<vmem>>, %arg4: memref<128x128xf32, #tpu.memory_space<vmem>>, %arg5: memref<1x128xf32, #tpu.memory_space<vmem>>, %arg6: memref<128x128xf32, #tpu.memory_space<vmem>>, %arg7: memref<1x128xf32, #tpu.memory_space<vmem>>, %arg8: memref<128x128xf32, #tpu.memory_space<vmem>>, %arg9: memref<1x128xf32, #tpu.memory_space<vmem>>, %arg10: memref<128x128xf32, #tpu.memory_space<vmem>>, %arg11: memref<1x128xf32, #tpu.memory_space<vmem>>, %arg12: memref<128x96xf32, #tpu.memory_space<vmem>>, %arg13: memref<1x96xf32, #tpu.memory_space<vmem>>, %arg14: memref<8x96xf32, #tpu.memory_space<vmem>>) attributes {dimension_semantics = [#tpu.dimension_semantics<parallel>], iteration_bounds = array<i64: 1>, scalar_prefetch = 0 : i64, scratch_operands = 0 : i64, tpu.core_type = #tpu.core_type<tc>, window_params = [{transform_indices = @transform_0, window_bounds = array<i64: 8, 96>}, {pipeline_mode = #tpu.pipeline_mode<synchronous>, transform_indices = @transform_1, window_bounds = array<i64: 96, 128>}, {pipeline_mode = #tpu.pipeline_mode<synchronous>, transform_indices = @transform_2, window_bounds = array<i64: 1, 128>}, {pipeline_mode = #tpu.pipeline_mode<synchronous>, transform_indices = @transform_3, window_bounds = array<i64: 128, 128>}, {pipeline_mode = #tpu.pipeline_mode<synchronous>, transform_indices = @transform_4, window_bounds = array<i64: 1, 128>}, {pipeline_mode = #tpu.pipeline_mode<synchronous>, transform_indices = @transform_5, window_bounds = array<i64: 128, 128>}, {pipeline_mode = #tpu.pipeline_mode<synchronous>, transform_indices = @transform_6, window_bounds = array<i64: 1, 128>}, {pipeline_mode = #tpu.pipeline_mode<synchronous>, transform_indices = @transform_7, window_bounds = array<i64: 128, 128>}, {pipeline_mode = #tpu.pipeline_mode<synchronous>, transform_indices = @transform_8, window_bounds = array<i64: 1, 128>}, {pipeline_mode = #tpu.pipeline_mode<synchronous>, transform_indices = @transform_9, window_bounds = array<i64: 128, 128>}, {pipeline_mode = #tpu.pipeline_mode<synchronous>, transform_indices = @transform_10, window_bounds = array<i64: 1, 128>}, {pipeline_mode = #tpu.pipeline_mode<synchronous>, transform_indices = @transform_11, window_bounds = array<i64: 128, 96>}, {pipeline_mode = #tpu.pipeline_mode<synchronous>, transform_indices = @transform_12, window_bounds = array<i64: 1, 96>}, {transform_indices = @transform_13, window_bounds = array<i64: 8, 96>}]} {
    %c0 = arith.constant 0 : index
    %c0_0 = arith.constant 0 : index
    %0 = vector.load %arg1[%c0, %c0_0] : memref<8x96xf32, #tpu.memory_space<vmem>>, vector<8x96xf32>
    %c0_1 = arith.constant 0 : index
    %c0_2 = arith.constant 0 : index
    %1 = vector.load %arg2[%c0_1, %c0_2] : memref<96x128xf32, #tpu.memory_space<vmem>>, vector<96x128xf32>
    %cst = arith.constant dense<0.000000e+00> : vector<8x128xf32>
    %2 = tpu.matmul %0, %1, %cst {dimension_numbers = #tpu.dot_dimension_numbers<[1], [0], [0], [1], [0, 0, 1, 1], [], []>} : vector<8x96xf32>, vector<96x128xf32>, vector<8x128xf32> -> vector<8x128xf32>
    %c0_3 = arith.constant 0 : index
    %c0_4 = arith.constant 0 : index
    %3 = vector.load %arg3[%c0_3, %c0_4] : memref<1x128xf32, #tpu.memory_space<vmem>>, vector<1x128xf32>
    %4 = vector.broadcast %3 : vector<1x128xf32> to vector<8x128xf32>
    %5 = arith.addf %2, %4 : vector<8x128xf32>
    %cst_5 = arith.constant 0.000000e+00 : f32
    %6 = vector.broadcast %cst_5 : f32 to vector<8x128xf32>
    %7 = arith.maximumf %5, %6 : vector<8x128xf32>
    %c0_6 = arith.constant 0 : index
    %c0_7 = arith.constant 0 : index
    %8 = vector.load %arg4[%c0_6, %c0_7] : memref<128x128xf32, #tpu.memory_space<vmem>>, vector<128x128xf32>
    %cst_8 = arith.constant dense<0.000000e+00> : vector<8x128xf32>
    %9 = tpu.matmul %7, %8, %cst_8 {dimension_numbers = #tpu.dot_dimension_numbers<[1], [0], [0], [1], [0, 0, 1, 1], [], []>} : vector<8x128xf32>, vector<128x128xf32>, vector<8x128xf32> -> vector<8x128xf32>
    %c0_9 = arith.constant 0 : index
    %c0_10 = arith.constant 0 : index
    %10 = vector.load %arg5[%c0_9, %c0_10] : memref<1x128xf32, #tpu.memory_space<vmem>>, vector<1x128xf32>
    %11 = vector.broadcast %10 : vector<1x128xf32> to vector<8x128xf32>
    %12 = arith.addf %9, %11 : vector<8x128xf32>
    %cst_11 = arith.constant 0.000000e+00 : f32
    %13 = vector.broadcast %cst_11 : f32 to vector<8x128xf32>
    %14 = arith.maximumf %12, %13 : vector<8x128xf32>
    %c0_12 = arith.constant 0 : index
    %c0_13 = arith.constant 0 : index
    %15 = vector.load %arg6[%c0_12, %c0_13] : memref<128x128xf32, #tpu.memory_space<vmem>>, vector<128x128xf32>
    %cst_14 = arith.constant dense<0.000000e+00> : vector<8x128xf32>
    %16 = tpu.matmul %14, %15, %cst_14 {dimension_numbers = #tpu.dot_dimension_numbers<[1], [0], [0], [1], [0, 0, 1, 1], [], []>} : vector<8x128xf32>, vector<128x128xf32>, vector<8x128xf32> -> vector<8x128xf32>
    %c0_15 = arith.constant 0 : index
    %c0_16 = arith.constant 0 : index
    %17 = vector.load %arg7[%c0_15, %c0_16] : memref<1x128xf32, #tpu.memory_space<vmem>>, vector<1x128xf32>
    %18 = vector.broadcast %17 : vector<1x128xf32> to vector<8x128xf32>
    %19 = arith.addf %16, %18 : vector<8x128xf32>
    %cst_17 = arith.constant 0.000000e+00 : f32
    %20 = vector.broadcast %cst_17 : f32 to vector<8x128xf32>
    %21 = arith.maximumf %19, %20 : vector<8x128xf32>
    %c0_18 = arith.constant 0 : index
    %c0_19 = arith.constant 0 : index
    %22 = vector.load %arg8[%c0_18, %c0_19] : memref<128x128xf32, #tpu.memory_space<vmem>>, vector<128x128xf32>
    %cst_20 = arith.constant dense<0.000000e+00> : vector<8x128xf32>
    %23 = tpu.matmul %21, %22, %cst_20 {dimension_numbers = #tpu.dot_dimension_numbers<[1], [0], [0], [1], [0, 0, 1, 1], [], []>} : vector<8x128xf32>, vector<128x128xf32>, vector<8x128xf32> -> vector<8x128xf32>
    %c0_21 = arith.constant 0 : index
    %c0_22 = arith.constant 0 : index
    %24 = vector.load %arg9[%c0_21, %c0_22] : memref<1x128xf32, #tpu.memory_space<vmem>>, vector<1x128xf32>
    %25 = vector.broadcast %24 : vector<1x128xf32> to vector<8x128xf32>
    %26 = arith.addf %23, %25 : vector<8x128xf32>
    %cst_23 = arith.constant 0.000000e+00 : f32
    %27 = vector.broadcast %cst_23 : f32 to vector<8x128xf32>
    %28 = arith.maximumf %26, %27 : vector<8x128xf32>
    %c0_24 = arith.constant 0 : index
    %c0_25 = arith.constant 0 : index
    %29 = vector.load %arg10[%c0_24, %c0_25] : memref<128x128xf32, #tpu.memory_space<vmem>>, vector<128x128xf32>
    %cst_26 = arith.constant dense<0.000000e+00> : vector<8x128xf32>
    %30 = tpu.matmul %28, %29, %cst_26 {dimension_numbers = #tpu.dot_dimension_numbers<[1], [0], [0], [1], [0, 0, 1, 1], [], []>} : vector<8x128xf32>, vector<128x128xf32>, vector<8x128xf32> -> vector<8x128xf32>
    %c0_27 = arith.constant 0 : index
    %c0_28 = arith.constant 0 : index
    %31 = vector.load %arg11[%c0_27, %c0_28] : memref<1x128xf32, #tpu.memory_space<vmem>>, vector<1x128xf32>
    %32 = vector.broadcast %31 : vector<1x128xf32> to vector<8x128xf32>
    %33 = arith.addf %30, %32 : vector<8x128xf32>
    %cst_29 = arith.constant 0.000000e+00 : f32
    %34 = vector.broadcast %cst_29 : f32 to vector<8x128xf32>
    %35 = arith.maximumf %33, %34 : vector<8x128xf32>
    %c0_30 = arith.constant 0 : index
    %c0_31 = arith.constant 0 : index
    %36 = vector.load %arg12[%c0_30, %c0_31] : memref<128x96xf32, #tpu.memory_space<vmem>>, vector<128x96xf32>
    %cst_32 = arith.constant dense<0.000000e+00> : vector<8x96xf32>
    %37 = tpu.matmul %35, %36, %cst_32 {dimension_numbers = #tpu.dot_dimension_numbers<[1], [0], [0], [1], [0, 0, 1, 1], [], []>} : vector<8x128xf32>, vector<128x96xf32>, vector<8x96xf32> -> vector<8x96xf32>
    %c0_33 = arith.constant 0 : index
    %c0_34 = arith.constant 0 : index
    %38 = vector.load %arg13[%c0_33, %c0_34] : memref<1x96xf32, #tpu.memory_space<vmem>>, vector<1x96xf32>
    %39 = vector.broadcast %38 : vector<1x96xf32> to vector<8x96xf32>
    %40 = arith.addf %37, %39 : vector<8x96xf32>
    %cst_35 = arith.constant 0.000000e+00 : f32
    %41 = vector.broadcast %cst_35 : f32 to vector<8x96xf32>
    %42 = arith.maximumf %40, %41 : vector<8x96xf32>
    %c0_36 = arith.constant 0 : index
    %c0_37 = arith.constant 0 : index
    %43 = vector.load %arg14[%c0_36, %c0_37] : memref<8x96xf32, #tpu.memory_space<vmem>>, vector<8x96xf32>
    tpu.vector_store %arg14[%c0_36, %c0_37], %42 {strides = array<i32>} : memref<8x96xf32, #tpu.memory_space<vmem>>, vector<8x96xf32>,
    return
  }
  func.func @transform_0(%arg0: i32) -> (i32, i32) {
    %c0_i32 = arith.constant 0 : i32
    %c0_i32_0 = arith.constant 0 : i32
    return %arg0, %c0_i32 : i32, i32
  }
  func.func @transform_1(%arg0: i32) -> (i32, i32) {
    %c0_i32 = arith.constant 0 : i32
    %c0_i32_0 = arith.constant 0 : i32
    %c0_i32_1 = arith.constant 0 : i32
    return %c0_i32, %c0_i32_0 : i32, i32
  }
  func.func @transform_2(%arg0: i32) -> (i32, i32) {
    %c0_i32 = arith.constant 0 : i32
    %c0_i32_0 = arith.constant 0 : i32
    %c0_i32_1 = arith.constant 0 : i32
    return %c0_i32, %c0_i32_0 : i32, i32
  }
  func.func @transform_3(%arg0: i32) -> (i32, i32) {
    %c0_i32 = arith.constant 0 : i32
    %c0_i32_0 = arith.constant 0 : i32
    %c0_i32_1 = arith.constant 0 : i32
    return %c0_i32, %c0_i32_0 : i32, i32
  }
  func.func @transform_4(%arg0: i32) -> (i32, i32) {
    %c0_i32 = arith.constant 0 : i32
    %c0_i32_0 = arith.constant 0 : i32
    %c0_i32_1 = arith.constant 0 : i32
    return %c0_i32, %c0_i32_0 : i32, i32
  }
  func.func @transform_5(%arg0: i32) -> (i32, i32) {
    %c0_i32 = arith.constant 0 : i32
    %c0_i32_0 = arith.constant 0 : i32
    %c0_i32_1 = arith.constant 0 : i32
    return %c0_i32, %c0_i32_0 : i32, i32
  }
  func.func @transform_6(%arg0: i32) -> (i32, i32) {
    %c0_i32 = arith.constant 0 : i32
    %c0_i32_0 = arith.constant 0 : i32
    %c0_i32_1 = arith.constant 0 : i32
    return %c0_i32, %c0_i32_0 : i32, i32
  }
  func.func @transform_7(%arg0: i32) -> (i32, i32) {
    %c0_i32 = arith.constant 0 : i32
    %c0_i32_0 = arith.constant 0 : i32
    %c0_i32_1 = arith.constant 0 : i32
    return %c0_i32, %c0_i32_0 : i32, i32
  }
  func.func @transform_8(%arg0: i32) -> (i32, i32) {
    %c0_i32 = arith.constant 0 : i32
    %c0_i32_0 = arith.constant 0 : i32
    %c0_i32_1 = arith.constant 0 : i32
    return %c0_i32, %c0_i32_0 : i32, i32
  }
  func.func @transform_9(%arg0: i32) -> (i32, i32) {
    %c0_i32 = arith.constant 0 : i32
    %c0_i32_0 = arith.constant 0 : i32
    %c0_i32_1 = arith.constant 0 : i32
    return %c0_i32, %c0_i32_0 : i32, i32
  }
  func.func @transform_10(%arg0: i32) -> (i32, i32) {
    %c0_i32 = arith.constant 0 : i32
    %c0_i32_0 = arith.constant 0 : i32
    %c0_i32_1 = arith.constant 0 : i32
    return %c0_i32, %c0_i32_0 : i32, i32
  }
  func.func @transform_11(%arg0: i32) -> (i32, i32) {
    %c0_i32 = arith.constant 0 : i32
    %c0_i32_0 = arith.constant 0 : i32
    %c0_i32_1 = arith.constant 0 : i32
    return %c0_i32, %c0_i32_0 : i32, i32
  }
  func.func @transform_12(%arg0: i32) -> (i32, i32) {
    %c0_i32 = arith.constant 0 : i32
    %c0_i32_0 = arith.constant 0 : i32
    %c0_i32_1 = arith.constant 0 : i32
    return %c0_i32, %c0_i32_0 : i32, i32
  }
  func.func @transform_13(%arg0: i32) -> (i32, i32) {
    %c0_i32 = arith.constant 0 : i32
    %c0_i32_0 = arith.constant 0 : i32
    return %arg0, %c0_i32 : i32, i32
  }
}

</mosaic_0001>

<bundles_post_ra>
// kernel: tpu_custom_call.1
= control target key start
LH: loop header
LB: loop body
LE: loop exit
PB: predicated region body
PF: predicated region fallthrough
CT: control target
= control target key end

     0   :  { %18 = vsyncpa [#allocation3], 0  ;;  %s1464_s0 = inlined_call_operand.hbm [shape: f32[8,96], index: 0, kind: input, shape index: {}]   ;;  %s1465_s1 = inlined_call_operand.vmem [shape: f32[96,128], index: 1, kind: input, shape index: {}]   ;;  %s1466_s2 = inlined_call_operand.vmem [shape: f32[1,128], index: 2, kind: input, shape index: {}]   ;;  %s1467_s3 = inlined_call_operand.vmem [shape: f32[128,128], index: 3, kind: input, shape index: {}]   ;;  %s1468_s4 = inlined_call_operand.vmem [shape: f32[1,128], index: 4, kind: input, shape index: {}]   ;;  %s1469_s5 = inlined_call_operand.hbm [shape: f32[128,128], index: 5, kind: input, shape index: {}]   ;;  %s1470_s6 = inlined_call_operand.vmem [shape: f32[1,128], index: 6, kind: input, shape index: {}]   ;;  %s1471_s7 = inlined_call_operand.hbm [shape: f32[128,128], index: 7, kind: input, shape index: {}]   ;;  %s1472_s8 = inlined_call_operand.vmem [shape: f32[1,128], index: 8, kind: input, shape index: {}]   ;;  %s1473_s9 = inlined_call_operand.hbm [shape: f32[128,128], index: 9, kind: input, shape index: {}]   ;;  %s1474_s10 = inlined_call_operand.vmem [shape: f32[1,128], index: 10, kind: input, shape index: {}]   ;;  %s1475_s11 = inlined_call_operand.vmem [shape: f32[128,96], index: 11, kind: input, shape index: {}]   ;;  %s1476_s12 = inlined_call_operand.vmem [shape: f32[1,96], index: 12, kind: input, shape index: {}]   ;;  %s1477_s13 = inlined_call_operand.hbm [shape: f32[8,96], index: 13, kind: output, shape index: {}]  }
   0x1   :  { %19 = vsyncpa [#allocation6], 0 }
   0x2   :  { %20 = vsyncpa [#allocation9], 0 }
   0x3   :  { %21 = vsyncpa [#allocation4], 0  ;;  %s1105_s25 = smov [#allocation5]  }
   0x4   :  { %s45_s26 = sshll.u32 %s1105_s25, 4  ;;  %s46_s26 = int_to_ptr.vmem [resolvable:$true] %s45_s26 }
   0x5   :  { %s1005_s27 = scalar_lea.vmem %s46_s26, 2048  ;;  %p1010_p1 = scmp.lt.s32.totalorder %s46_s26, %s46_s26 }
   0x6   :  { %p1006_p0 = scmp.ne.s32.totalorder %s46_s26, %s1005_s27  ;;  %p1011_p2 = scmp.lt.s32.totalorder %s1005_s27, %s1005_s27 }
   0x8   :  { %p1012_p3 = por %p1011_p2, %p1010_p1 }
   0xa   :  { %p1013_p4 = pnand %p1012_p3, %p1006_p0 }
   0xc   :  { %1016 = shalt.err (!%p1013_p4)
}
   0xd   :  { %s1106_s28 = smov 128   ;;  %s1107_s29 = smov 8  }
   0xe   :  { %51 = dma.hbm_to_vmem [thread:$0]  %s1469_s5, 2048, %s46_s26, [#allocation6], %s1106_s28, %s1106_s28, %s1107_s29  }
   0xf   :  { %s1108_s15 = smov [#allocation2]   ;;  %s1109_s17 = smov [#allocation7]  }
  0x10   :  { %s28_s16 = sshll.u32 %s1108_s15, 4  ;;  %s59_s18 = sshll.u32 %s1109_s17, 4  ;;  %s29_s16 = int_to_ptr.vmem [resolvable:$true] %s28_s16  ;;  %s60_s18 = int_to_ptr.vmem [resolvable:$true] %s59_s18 }
  0x11   :  { %s1025_s19 = scalar_lea.vmem %s29_s16, 128  ;;  %p1030_p6 = scmp.lt.s32.totalorder %s29_s16, %s29_s16 }
  0x12   :  { %p1026_p5 = scmp.ne.s32.totalorder %s29_s16, %s1025_s19  ;;  %p1031_p7 = scmp.lt.s32.totalorder %s1025_s19, %s1025_s19 }
  0x14   :  { %p1032_p8 = por %p1031_p7, %p1030_p6 }
  0x16   :  { %p1033_p9 = pnand %p1032_p8, %p1026_p5 }
  0x18   :  { %1036 = shalt.err (!%p1033_p9)
}
  0x19   :  { %31 = dma.hbm_to_vmem [thread:$0]  %s1464_s0, 128, %s29_s16, [#allocation3]  }
  0x1a   :  { %s1045_s22 = scalar_lea.vmem %s60_s18, 2048  ;;  %p1050_p11 = scmp.lt.s32.totalorder %s60_s18, %s60_s18 }
  0x1b   :  { %p1046_p10 = scmp.ne.s32.totalorder %s60_s18, %s1045_s22  ;;  %p1051_p12 = scmp.lt.s32.totalorder %s1045_s22, %s1045_s22 }
  0x1d   :  { %p1052_p13 = por %p1051_p12, %p1050_p11 }
  0x1f   :  { %p1053_p0 = pnand %p1052_p13, %p1046_p10 }
  0x21   :  { %1056 = shalt.err (!%p1053_p0)
}
  0x22   :  { %65 = dma.hbm_to_vmem [thread:$0]  %s1471_s7, 2048, %s60_s18, [#allocation6], %s1106_s28, %s1106_s28, %s1107_s29  }
  0x23   :  { %s1110_s24 = smov [#allocation8]  }
  0x24   :  { %s73_s25 = sshll.u32 %s1110_s24, 4  ;;  %s74_s25 = int_to_ptr.vmem [resolvable:$true] %s73_s25 }
  0x25   :  { %s1065_s26 = scalar_lea.vmem %s74_s25, 2048  ;;  %p1070_p2 = scmp.lt.s32.totalorder %s74_s25, %s74_s25 }
  0x26   :  { %p1066_p1 = scmp.ne.s32.totalorder %s74_s25, %s1065_s26  ;;  %p1071_p3 = scmp.lt.s32.totalorder %s1065_s26, %s1065_s26 }
  0x28   :  { %p1072_p4 = por %p1071_p3, %p1070_p2 }
  0x2a   :  { %p1073_p5 = pnand %p1072_p4, %p1066_p1 }
  0x2c   :  { %1076 = shalt.err (!%p1073_p5)
}
  0x2d   :  { %79 = dma.hbm_to_vmem [thread:$0]  %s1473_s9, 2048, %s74_s25, [#allocation9], %s1106_s28, %s1106_s28, %s1107_s29  }
  0x2e   :  { %1097 = dma.done.wait [#allocation3], 128  }
  0x2f   :  { %1098 = vsyncadd [#allocation3], 4294967168 }
  0x30   :  { %1099 = dma.done.wait [#allocation6], 4096  }
  0x31   :  { %1100 = vsyncadd [#allocation6], 4294963200 }
  0x32   :  { %1101 = dma.done.wait [#allocation9], 2048  }
  0x33   :  { %1102 = vsyncadd [#allocation9], 4294965248  ;;  %v1111_v0 = vmov 0.0   ;;  %vm1112_vm0 = vmmov 0   ;;  %v110_v1 = vld [vmem:[%s1465_s1 + $0x58] sm:$0xff]  ;;  %v109_v2 = vld [vmem:[%s1465_s1 + $0x50] sm:$0xff] }
  0x34   :  { %786 = vmatprep.subr.mxu0 %v1111_v0  ;;  %810 = vmatprep.mubr.msk.f32.mxu0 %vm1112_vm0, %v1111_v0  ;;  %v108_v3 = vld [vmem:[%s1465_s1 + $0x48] sm:$0xff]  ;;  %v107_v4 = vld [vmem:[%s1465_s1 + $0x40] sm:$0xff]  ;;  %v208_v5 = vld [vmem:[%s1467_s3 + $0x78] sm:$0xff]  ;;  %vm118_vm1 = vcmask 785408   ;;  %s1113_s30 = smov [#allocation10]  }
  0x35   :  { %813 = vmatprep.subr.mxu1 %v1111_v0  ;;  %845 = vmatprep.mubr.msk.f32.mxu1 %vm1112_vm0, %v1111_v0  ;;  %v207_v6 = vld [vmem:[%s1467_s3 + $0x70] sm:$0xff]  ;;  %v106_v7 = vld [vmem:[%s1465_s1 + $0x38] sm:$0xff]  ;;  %v206_v8 = vld [vmem:[%s1467_s3 + $0x68] sm:$0xff]  ;;  %s670_s14 = sshll.u32 %s1113_s30, 4  ;;  %s671_s14 = int_to_ptr.vmem [resolvable:$true] %s670_s14 }
  0x36   :  { %787 = vmatpush3.msra.mxu0 %v110_v1  ;;  %814 = vmatpush3.msra.mxu1 %v208_v5  ;;  %v105_v9 = vld [vmem:[%s1465_s1 + $0x30] sm:$0xff]  ;;  %v205_v10 = vld [vmem:[%s1467_s3 + $0x60] sm:$0xff]  ;;  %v104_v11 = vld [vmem:[%s1465_s1 + $0x28] sm:$0xff]  ;;  %p1082_p7 = scmp.lt.s32.totalorder %s671_s14, %s671_s14 }
  0x37   :  { %788 = vmatprep.subr.mxu0 %v1111_v0  ;;  %815 = vmatprep.subr.mxu1 %v1111_v0  ;;  %v204_v12 = vld [vmem:[%s1467_s3 + $0x58] sm:$0xff]  ;;  %v103_v13 = vld [vmem:[%s1465_s1 + $0x20] sm:$0xff]  ;;  %v203_v14 = vld [vmem:[%s1467_s3 + $0x50] sm:$0xff] }
  0x38   :  { %789 = vmatpush3.msra.mxu0 %v109_v2  ;;  %816 = vmatpush3.msra.mxu1 %v207_v6  ;;  %v102_v15 = vld [vmem:[%s1465_s1 + $0x18] sm:$0xff]  ;;  %v202_v16 = vld [vmem:[%s1467_s3 + $0x48] sm:$0xff]  ;;  %v101_v17 = vld [vmem:[%s1465_s1 + $0x10] sm:$0xff] }
  0x39   :  { %790 = vmatprep.subr.mxu0 %v1111_v0  ;;  %817 = vmatprep.subr.mxu1 %v1111_v0  ;;  %v201_v18 = vld [vmem:[%s1467_s3 + $0x40] sm:$0xff]  ;;  %v100_v19 = vld [vmem:[%s1465_s1 + $0x8] sm:$0xff]  ;;  %v200_v20 = vld [vmem:[%s1467_s3 + $0x38] sm:$0xff] }
  0x3a   :  { %791 = vmatpush3.msra.mxu0 %v108_v3  ;;  %818 = vmatpush3.msra.mxu1 %v206_v8  ;;  %v99_v21 = vld [vmem:[%s1465_s1] sm:$0xff]  ;;  %v199_v22 = vld [vmem:[%s1467_s3 + $0x30] sm:$0xff]  ;;  %v198_v24 = vld [vmem:[%s1467_s3 + $0x28] sm:$0xff] }
  0x3b   :  { %792 = vmatprep.subr.mxu0 %v1111_v0  ;;  %819 = vmatprep.subr.mxu1 %v1111_v0  ;;  %v98_v23 = vld [vmem:[#allocation2] sm:$0xff]  ;;  %v196_v26 = vld [vmem:[%s1467_s3 + $0x18] sm:$0xff]  ;;  %v195_v27 = vld [vmem:[%s1467_s3 + $0x10] sm:$0xff] }
  0x3c   :  { %793 = vmatpush3.msra.mxu0 %v107_v4  ;;  %820 = vmatpush3.msra.mxu1 %v205_v10  ;;  %v197_v25 = vld [vmem:[%s1467_s3 + $0x20] sm:$0xff]  ;;  %v194_v28 = vld [vmem:[%s1467_s3 + $0x8] sm:$0xff]  ;;  %v301_v31 = vld [vmem:[#allocation5 + $0x70] sm:$0xff] }
  0x3d   :  { %794 = vmatprep.subr.mxu0 %v1111_v0  ;;  %821 = vmatprep.subr.mxu1 %v1111_v0  ;;  %v193_v29 = vld [vmem:[%s1467_s3] sm:$0xff]  ;;  %v300_v32 = vld [vmem:[#allocation5 + $0x68] sm:$0xff]  ;;  %v299_v33 = vld [vmem:[#allocation5 + $0x60] sm:$0xff] }
  0x3e   :  { %795 = vmatpush3.msra.mxu0 %v106_v7  ;;  %822 = vmatpush3.msra.mxu1 %v204_v12  ;;  %v302_v30 = vld [vmem:[#allocation5 + $0x78] sm:$0xff]  ;;  %v297_v35 = vld [vmem:[#allocation5 + $0x50] sm:$0xff]  ;;  %v296_v36 = vld [vmem:[#allocation5 + $0x48] sm:$0xff] }
  0x3f   :  { %796 = vmatprep.subr.mxu0 %v1111_v0  ;;  %823 = vmatprep.subr.mxu1 %v1111_v0  ;;  %v298_v34 = vld [vmem:[#allocation5 + $0x58] sm:$0xff]  ;;  %v295_v37 = vld [vmem:[#allocation5 + $0x40] sm:$0xff]  ;;  %v293_v39 = vld [vmem:[#allocation5 + $0x30] sm:$0xff] }
  0x40   :  { %797 = vmatpush3.msra.mxu0 %v105_v9  ;;  %824 = vmatpush3.msra.mxu1 %v203_v14  ;;  %v294_v38 = vld [vmem:[#allocation5 + $0x38] sm:$0xff]  ;;  %v292_v40 = vld [vmem:[#allocation5 + $0x28] sm:$0xff]  ;;  %v291_v41 = vld [vmem:[#allocation5 + $0x20] sm:$0xff] }
  0x41   :  { %798 = vmatprep.subr.mxu0 %v1111_v0  ;;  %825 = vmatprep.subr.mxu1 %v1111_v0  ;;  %v290_v42 = vld [vmem:[#allocation5 + $0x18] sm:$0xff]  ;;  %v289_v48 = vld [vmem:[#allocation5 + $0x10] sm:$0xff]  ;;  %v288_v49 = vld [vmem:[#allocation5 + $0x8] sm:$0xff] }
  0x42   :  { %799 = vmatpush3.msra.mxu0 %v104_v11  ;;  %826 = vmatpush3.msra.mxu1 %v202_v16  ;;  %v681_v43 = vld [vmem:[%s1466_s2] ss:$0 sm:$0xff]  ;;  %v287_v50 = vld [vmem:[#allocation5] sm:$0xff]  ;;  %v395_v52 = vld [vmem:[#allocation7 + $0x70] sm:$0xff] }
  0x43   :  { %800 = vmatprep.subr.mxu0 %v1111_v0  ;;  %827 = vmatprep.subr.mxu1 %v1111_v0  ;;  %v396_v51 = vld [vmem:[#allocation7 + $0x78] sm:$0xff]  ;;  %v394_v53 = vld [vmem:[#allocation7 + $0x68] sm:$0xff]  ;;  %v393_v54 = vld [vmem:[#allocation7 + $0x60] sm:$0xff] }
  0x44   :  { %801 = vmatpush3.msra.mxu0 %v103_v13  ;;  %828 = vmatpush3.msra.mxu1 %v201_v18  ;;  %v392_v55 = vld [vmem:[#allocation7 + $0x58] sm:$0xff]  ;;  %v391_v56 = vld [vmem:[#allocation7 + $0x50] sm:$0xff]  ;;  %v390_v57 = vld [vmem:[#allocation7 + $0x48] sm:$0xff] }
  0x45   :  { %802 = vmatprep.subr.mxu0 %v1111_v0  ;;  %829 = vmatprep.subr.mxu1 %v1111_v0  ;;  %v389_v58 = vld [vmem:[#allocation7 + $0x40] sm:$0xff]  ;;  %v388_v59 = vld [vmem:[#allocation7 + $0x38] sm:$0xff]  ;;  %v387_v60 = vld [vmem:[#allocation7 + $0x30] sm:$0xff] }
  0x46   :  { %803 = vmatpush3.msra.mxu0 %v102_v15  ;;  %830 = vmatpush3.msra.mxu1 %v200_v20  ;;  %v386_v61 = vld [vmem:[#allocation7 + $0x28] sm:$0xff]  ;;  %v385_v62 = vld [vmem:[#allocation7 + $0x20] sm:$0xff]  ;;  %v384_v63 = vld [vmem:[#allocation7 + $0x18] sm:$0xff] }
  0x47   :  { %804 = vmatprep.subr.mxu0 %v1111_v0  ;;  %831 = vmatprep.subr.mxu1 %v1111_v0  ;;  %v683_v1 = vld [vmem:[%s1468_s4] ss:$0 sm:$0xff]  ;;  %v383_v6 = vld [vmem:[#allocation7 + $0x10] sm:$0xff]  ;;  %v382_v7 = vld [vmem:[#allocation7 + $0x8] sm:$0xff] }
  0x48   :  { %805 = vmatpush3.msra.mxu0 %v101_v17  ;;  %832 = vmatpush3.msra.mxu1 %v199_v22  ;;  %v381_v8 = vld [vmem:[#allocation7] sm:$0xff]  ;;  %v490_v9 = vld [vmem:[#allocation8 + $0x78] sm:$0xff]  ;;  %v489_v10 = vld [vmem:[#allocation8 + $0x70] sm:$0xff] }
  0x49   :  { %806 = vmatprep.subr.mxu0 %v1111_v0  ;;  %833 = vmatprep.subr.mxu1 %v1111_v0  ;;  %v488_v11 = vld [vmem:[#allocation8 + $0x68] sm:$0xff]  ;;  %v487_v12 = vld [vmem:[#allocation8 + $0x60] sm:$0xff]  ;;  %v486_v13 = vld [vmem:[#allocation8 + $0x58] sm:$0xff] }
  0x4a   :  { %807 = vmatpush3.msra.mxu0 %v100_v19  ;;  %834 = vmatpush3.msra.mxu1 %v198_v24  ;;  %v485_v14 = vld [vmem:[#allocation8 + $0x50] sm:$0xff]  ;;  %v484_v15 = vld [vmem:[#allocation8 + $0x48] sm:$0xff]  ;;  %v483_v16 = vld [vmem:[#allocation8 + $0x40] sm:$0xff] }
  0x4b   :  { %808 = vmatprep.subr.mxu0 %v1111_v0  ;;  %835 = vmatprep.subr.mxu1 %v1111_v0  ;;  %v482_v17 = vld [vmem:[#allocation8 + $0x38] sm:$0xff]  ;;  %v481_v18 = vld [vmem:[#allocation8 + $0x30] sm:$0xff]  ;;  %v480_v19 = vld [vmem:[#allocation8 + $0x28] sm:$0xff] }
  0x4c   :  { %809 = vmatpush3.msra.mxu0 %v99_v21  ;;  %836 = vmatpush3.msra.mxu1 %v197_v25  ;;  %v479_v20 = vld [vmem:[#allocation8 + $0x20] sm:$0xff]  ;;  %v478_v21 = vld [vmem:[#allocation8 + $0x18] sm:$0xff] }
  0x4d   :  { %811 = vmatmul.mubr.msk.f32.vlgmr.msra.gmra.mxu0 %vm118_vm1, %v98_v23  ;;  %848 = vmatprep.subr.mxu0 %v1111_v0  ;;  %v684_v22 = vld [vmem:[%s1470_s6] ss:$0 sm:$0xff] }
  0x4e   :  { %880 = vmatprep.mubr.msk.f32.mxu0 %vm1112_vm0, %v1111_v0  ;;  %837 = vmatprep.subr.mxu1 %v1111_v0 }
  0x4f   :  { %838 = vmatpush3.msra.mxu1 %v196_v26  ;;  %849 = vmatpush3.msra.mxu0 %v302_v30  ;;  %v584_v30 = vld [vmem:[%s1475_s11 + $0x78] sm:$0xff] }
  0x50   :  { %839 = vmatprep.subr.mxu1 %v1111_v0  ;;  %850 = vmatprep.subr.mxu0 %v1111_v0 }
  0x51   :  { %840 = vmatpush3.msra.mxu1 %v195_v27  ;;  %851 = vmatpush3.msra.mxu0 %v301_v31  ;;  %v477_v27 = vld [vmem:[#allocation8 + $0x10] sm:$0xff]  ;;  %v583_v31 = vld [vmem:[%s1475_s11 + $0x70] sm:$0xff] }
  0x52   :  { %841 = vmatprep.subr.mxu1 %v1111_v0  ;;  %852 = vmatprep.subr.mxu0 %v1111_v0 }
  0x53   :  { %842 = vmatpush3.msra.mxu1 %v194_v28  ;;  %853 = vmatpush3.msra.mxu0 %v300_v32  ;;  %v476_v28 = vld [vmem:[#allocation8 + $0x8] sm:$0xff]  ;;  %v582_v32 = vld [vmem:[%s1475_s11 + $0x68] sm:$0xff] }
  0x54   :  { %843 = vmatprep.subr.mxu1 %v1111_v0  ;;  %854 = vmatprep.subr.mxu0 %v1111_v0 }
  0x55   :  { %844 = vmatpush3.msra.mxu1 %v193_v29  ;;  %855 = vmatpush3.msra.mxu0 %v299_v33  ;;  %v475_v29 = vld [vmem:[#allocation8] sm:$0xff]  ;;  %v581_v33 = vld [vmem:[%s1475_s11 + $0x60] sm:$0xff] }
  0x56   :  { %883 = vmatprep.subr.mxu1 %v1111_v0  ;;  %856 = vmatprep.subr.mxu0 %v1111_v0 }
  0x57   :  { %857 = vmatpush3.msra.mxu0 %v298_v34  ;;  %v580_v34 = vld [vmem:[%s1475_s11 + $0x58] sm:$0xff] }
  0x58   :  { %858 = vmatprep.subr.mxu0 %v1111_v0 }
  0x59   :  { %859 = vmatpush3.msra.mxu0 %v297_v35  ;;  %v579_v35 = vld [vmem:[%s1475_s11 + $0x50] sm:$0xff] }
  0x5a   :  { %860 = vmatprep.subr.mxu0 %v1111_v0 }
  0x5b   :  { %861 = vmatpush3.msra.mxu0 %v296_v36  ;;  %v578_v36 = vld [vmem:[%s1475_s11 + $0x48] sm:$0xff] }
  0x5c   :  { %862 = vmatprep.subr.mxu0 %v1111_v0 }
  0x5d   :  { %863 = vmatpush3.msra.mxu0 %v295_v37  ;;  %v577_v37 = vld [vmem:[%s1475_s11 + $0x40] sm:$0xff] }
  0x5e   :  { %864 = vmatprep.subr.mxu0 %v1111_v0 }
  0x5f   :  { %865 = vmatpush3.msra.mxu0 %v294_v38  ;;  %v576_v38 = vld [vmem:[%s1475_s11 + $0x38] sm:$0xff] }
  0x60   :  { %866 = vmatprep.subr.mxu0 %v1111_v0 }
  0x61   :  { %867 = vmatpush3.msra.mxu0 %v293_v39  ;;  %v575_v39 = vld [vmem:[%s1475_s11 + $0x30] sm:$0xff] }
  0x62   :  { %868 = vmatprep.subr.mxu0 %v1111_v0 }
  0x63   :  { %869 = vmatpush3.msra.mxu0 %v292_v40  ;;  %v574_v40 = vld [vmem:[%s1475_s11 + $0x28] sm:$0xff] }
  0x64   :  { %870 = vmatprep.subr.mxu0 %v1111_v0 }
  0x65   :  { %871 = vmatpush3.msra.mxu0 %v291_v41  ;;  %v573_v41 = vld [vmem:[%s1475_s11 + $0x20] sm:$0xff] }
  0x66   :  { %872 = vmatprep.subr.mxu0 %v1111_v0 }
  0x67   :  { %873 = vmatpush3.msra.mxu0 %v290_v42  ;;  %v572_v42 = vld [vmem:[%s1475_s11 + $0x18] sm:$0xff] }
  0x68   :  { %874 = vmatprep.subr.mxu0 %v1111_v0 }
  0x69   :  { %875 = vmatpush3.msra.mxu0 %v289_v48  ;;  %v571_v48 = vld [vmem:[%s1475_s11 + $0x10] sm:$0xff] }
  0x6a   :  { %876 = vmatprep.subr.mxu0 %v1111_v0 }
  0x6b   :  { %877 = vmatpush3.msra.mxu0 %v288_v49  ;;  %v570_v49 = vld [vmem:[%s1475_s11 + $0x8] sm:$0xff] }
  0x6c   :  { %878 = vmatprep.subr.mxu0 %v1111_v0 }
  0x6d   :  { %879 = vmatpush3.msra.mxu0 %v287_v50  ;;  %v569_v50 = vld [vmem:[%s1475_s11] sm:$0xff]  ;;  %s1077_s11 = scalar_lea.vmem %s671_s14, 128 }
  0x6e   :  { %918 = vmatprep.subr.mxu0 %v1111_v0  ;;  %p1078_p6 = scmp.ne.s32.totalorder %s671_s14, %s1077_s11  ;;  %p1083_p8 = scmp.lt.s32.totalorder %s1077_s11, %s1077_s11 }
  0x70   :  { %p1084_p9 = por %p1083_p8, %p1082_p7 }
  0x72   :  { %p1085_p10 = pnand %p1084_p9, %p1078_p6 }
 0x10d   :  { %v188_v44 = vpop.f32.mrf.mxu0 }
 0x10e   :  { %v189_v45 = vadd.f32 %v681_v43, %v188_v44  ;;  %v685_v43 = vld [vmem:[%s1472_s8] ss:$0 sm:$0xff] }
 0x10f   :  { %v812_v46 = vpop.f32.mrf.mxu0 }
 0x110   :  { %v192_v47 = vmax.f32 %v189_v45, 0.0 }
 0x112   :  { %846 = vmatmul.mubr.f32.vlgmr.msra.gmra.mxu1 %v192_v47 }
 0x113   :  { %915 = vmatprep.mubr.msk.f32.mxu1 %vm1112_vm0, %v1111_v0  ;;  %884 = vmatpush3.msra.mxu1 %v396_v51  ;;  %v686_v51 = vld [vmem:[%s1474_s10] ss:$0 sm:$0xff] }
 0x114   :  { %885 = vmatprep.subr.mxu1 %v1111_v0 }
 0x115   :  { %886 = vmatpush3.msra.mxu1 %v395_v52 }
 0x116   :  { %887 = vmatprep.subr.mxu1 %v1111_v0 }
 0x117   :  { %888 = vmatpush3.msra.mxu1 %v394_v53 }
 0x118   :  { %889 = vmatprep.subr.mxu1 %v1111_v0 }
 0x119   :  { %890 = vmatpush3.msra.mxu1 %v393_v54 }
 0x11a   :  { %891 = vmatprep.subr.mxu1 %v1111_v0 }
 0x11b   :  { %892 = vmatpush3.msra.mxu1 %v392_v55 }
 0x11c   :  { %893 = vmatprep.subr.mxu1 %v1111_v0 }
 0x11d   :  { %894 = vmatpush3.msra.mxu1 %v391_v56  ;;  %v687_v56 = vld [vmem:[%s1476_s12] ss:$0 sm:$0xff] }
 0x11e   :  { %895 = vmatprep.subr.mxu1 %v1111_v0 }
 0x11f   :  { %896 = vmatpush3.msra.mxu1 %v390_v57 }
 0x120   :  { %897 = vmatprep.subr.mxu1 %v1111_v0 }
 0x121   :  { %898 = vmatpush3.msra.mxu1 %v389_v58 }
 0x122   :  { %899 = vmatprep.subr.mxu1 %v1111_v0 }
 0x123   :  { %900 = vmatpush3.msra.mxu1 %v388_v59 }
 0x124   :  { %901 = vmatprep.subr.mxu1 %v1111_v0 }
 0x125   :  { %902 = vmatpush3.msra.mxu1 %v387_v60 }
 0x126   :  { %903 = vmatprep.subr.mxu1 %v1111_v0 }
 0x127   :  { %904 = vmatpush3.msra.mxu1 %v386_v61 }
 0x128   :  { %905 = vmatprep.subr.mxu1 %v1111_v0 }
 0x129   :  { %906 = vmatpush3.msra.mxu1 %v385_v62 }
 0x12a   :  { %907 = vmatprep.subr.mxu1 %v1111_v0 }
 0x12b   :  { %908 = vmatpush3.msra.mxu1 %v384_v63 }
 0x12c   :  { %909 = vmatprep.subr.mxu1 %v1111_v0 }
 0x12d   :  { %910 = vmatpush3.msra.mxu1 %v383_v6 }
 0x12e   :  { %911 = vmatprep.subr.mxu1 %v1111_v0 }
 0x12f   :  { %912 = vmatpush3.msra.mxu1 %v382_v7 }
 0x130   :  { %913 = vmatprep.subr.mxu1 %v1111_v0 }
 0x131   :  { %914 = vmatpush3.msra.mxu1 %v381_v8 }
 0x132   :  { %953 = vmatprep.subr.mxu1 %v1111_v0 }
 0x1d2   :  { %v282_v2 = vpop.f32.mrf.mxu1 }
 0x1d3   :  { %v283_v3 = vadd.f32 %v683_v1, %v282_v2 }
 0x1d4   :  { %v847_v4 = vpop.f32.mrf.mxu1 }
 0x1d5   :  { %v286_v5 = vmax.f32 %v283_v3, 0.0 }
 0x1d7   :  { %881 = vmatmul.mubr.f32.vlgmr.msra.gmra.mxu0 %v286_v5 }
 0x1d8   :  { %950 = vmatprep.mubr.msk.f32.mxu0 %vm1112_vm0, %v1111_v0  ;;  %919 = vmatpush3.msra.mxu0 %v490_v9 }
 0x1d9   :  { %920 = vmatprep.subr.mxu0 %v1111_v0 }
 0x1da   :  { %921 = vmatpush3.msra.mxu0 %v489_v10 }
 0x1db   :  { %922 = vmatprep.subr.mxu0 %v1111_v0 }
 0x1dc   :  { %923 = vmatpush3.msra.mxu0 %v488_v11 }
 0x1dd   :  { %924 = vmatprep.subr.mxu0 %v1111_v0 }
 0x1de   :  { %925 = vmatpush3.msra.mxu0 %v487_v12 }
 0x1df   :  { %926 = vmatprep.subr.mxu0 %v1111_v0 }
 0x1e0   :  { %927 = vmatpush3.msra.mxu0 %v486_v13 }
 0x1e1   :  { %928 = vmatprep.subr.mxu0 %v1111_v0 }
 0x1e2   :  { %929 = vmatpush3.msra.mxu0 %v485_v14 }
 0x1e3   :  { %930 = vmatprep.subr.mxu0 %v1111_v0 }
 0x1e4   :  { %931 = vmatpush3.msra.mxu0 %v484_v15 }
 0x1e5   :  { %932 = vmatprep.subr.mxu0 %v1111_v0 }
 0x1e6   :  { %933 = vmatpush3.msra.mxu0 %v483_v16 }
 0x1e7   :  { %934 = vmatprep.subr.mxu0 %v1111_v0 }
 0x1e8   :  { %935 = vmatpush3.msra.mxu0 %v482_v17 }
 0x1e9   :  { %936 = vmatprep.subr.mxu0 %v1111_v0 }
 0x1ea   :  { %937 = vmatpush3.msra.mxu0 %v481_v18 }
 0x1eb   :  { %938 = vmatprep.subr.mxu0 %v1111_v0 }
 0x1ec   :  { %939 = vmatpush3.msra.mxu0 %v480_v19 }
 0x1ed   :  { %940 = vmatprep.subr.mxu0 %v1111_v0 }
 0x1ee   :  { %941 = vmatpush3.msra.mxu0 %v479_v20 }
 0x1ef   :  { %942 = vmatprep.subr.mxu0 %v1111_v0 }
 0x1f0   :  { %943 = vmatpush3.msra.mxu0 %v478_v21 }
 0x1f1   :  { %944 = vmatprep.subr.mxu0 %v1111_v0 }
 0x1f2   :  { %945 = vmatpush3.msra.mxu0 %v477_v27 }
 0x1f3   :  { %946 = vmatprep.subr.mxu0 %v1111_v0 }
 0x1f4   :  { %947 = vmatpush3.msra.mxu0 %v476_v28 }
 0x1f5   :  { %948 = vmatprep.subr.mxu0 %v1111_v0 }
 0x1f6   :  { %949 = vmatpush3.msra.mxu0 %v475_v29 }
 0x297   :  { %v376_v23 = vpop.f32.mrf.mxu0 }
 0x298   :  { %v377_v24 = vadd.f32 %v684_v22, %v376_v23 }
 0x299   :  { %v882_v25 = vpop.f32.mrf.mxu0 }
 0x29a   :  { %v380_v26 = vmax.f32 %v377_v24, 0.0 }
 0x29c   :  { %916 = vmatmul.mubr.f32.vlgmr.msra.gmra.mxu1 %v380_v26 }
 0x29d   :  { %985 = vmatprep.mubr.msk.f32.mxu1 %vm1112_vm0, %v1111_v0  ;;  %954 = vmatpush3.msra.mxu1 %v584_v30 }
 0x29e   :  { %955 = vmatprep.subr.mxu1 %v1111_v0 }
 0x29f   :  { %956 = vmatpush3.msra.mxu1 %v583_v31 }
 0x2a0   :  { %957 = vmatprep.subr.mxu1 %v1111_v0 }
 0x2a1   :  { %958 = vmatpush3.msra.mxu1 %v582_v32 }
 0x2a2   :  { %959 = vmatprep.subr.mxu1 %v1111_v0 }
 0x2a3   :  { %960 = vmatpush3.msra.mxu1 %v581_v33 }
 0x2a4   :  { %961 = vmatprep.subr.mxu1 %v1111_v0 }
 0x2a5   :  { %962 = vmatpush3.msra.mxu1 %v580_v34 }
 0x2a6   :  { %963 = vmatprep.subr.mxu1 %v1111_v0 }
 0x2a7   :  { %964 = vmatpush3.msra.mxu1 %v579_v35 }
 0x2a8   :  { %965 = vmatprep.subr.mxu1 %v1111_v0 }
 0x2a9   :  { %966 = vmatpush3.msra.mxu1 %v578_v36 }
 0x2aa   :  { %967 = vmatprep.subr.mxu1 %v1111_v0 }
 0x2ab   :  { %968 = vmatpush3.msra.mxu1 %v577_v37 }
 0x2ac   :  { %969 = vmatprep.subr.mxu1 %v1111_v0 }
 0x2ad   :  { %970 = vmatpush3.msra.mxu1 %v576_v38 }
 0x2ae   :  { %971 = vmatprep.subr.mxu1 %v1111_v0 }
 0x2af   :  { %972 = vmatpush3.msra.mxu1 %v575_v39 }
 0x2b0   :  { %973 = vmatprep.subr.mxu1 %v1111_v0 }
 0x2b1   :  { %974 = vmatpush3.msra.mxu1 %v574_v40 }
 0x2b2   :  { %975 = vmatprep.subr.mxu1 %v1111_v0 }
 0x2b3   :  { %976 = vmatpush3.msra.mxu1 %v573_v41 }
 0x2b4   :  { %977 = vmatprep.subr.mxu1 %v1111_v0 }
 0x2b5   :  { %978 = vmatpush3.msra.mxu1 %v572_v42 }
 0x2b6   :  { %979 = vmatprep.subr.mxu1 %v1111_v0 }
 0x2b7   :  { %980 = vmatpush3.msra.mxu1 %v571_v48 }
 0x2b8   :  { %981 = vmatprep.subr.mxu1 %v1111_v0 }
 0x2b9   :  { %982 = vmatpush3.msra.mxu1 %v570_v49 }
 0x2ba   :  { %983 = vmatprep.subr.mxu1 %v1111_v0 }
 0x2bb   :  { %984 = vmatpush3.msra.mxu1 %v569_v50 }
 0x35c   :  { %v470_v44 = vpop.f32.mrf.mxu1 }
 0x35d   :  { %v471_v45 = vadd.f32 %v685_v43, %v470_v44 }
 0x35e   :  { %v917_v46 = vpop.f32.mrf.mxu1 }
 0x35f   :  { %v474_v47 = vmax.f32 %v471_v45, 0.0 }
 0x361   :  { %951 = vmatmul.mubr.f32.vlgmr.msra.gmra.mxu0 %v474_v47 }
 0x421   :  { %v564_v52 = vpop.f32.mrf.mxu0 }
 0x422   :  { %v565_v53 = vadd.f32 %v686_v51, %v564_v52 }
 0x423   :  { %v952_v54 = vpop.f32.mrf.mxu0 }
 0x424   :  { %v568_v55 = vmax.f32 %v565_v53, 0.0 }
 0x426   :  { %986 = vmatmul.mubr.f32.vlgmr.msra.gmra.mxu1 %v568_v55 }
 0x4e6   :  { %v658_v57 = vpop.f32.mrf.mxu1 }
 0x4e7   :  { %v659_v0 = vadd.f32 %v687_v56, %v658_v57 }
 0x4e8   :  { %v987_v58 = vpop.f32.mrf.mxu1 }
 0x4e9   :  { %v662_v59 = vmax.f32 %v659_v0, 0.0 }
 0x4eb   :  { %663 = vst.msk [vmem:[#allocation10] sm:$0xff] %vm118_vm1, %v662_v59 }
 0x4ec   :  { %1088 = shalt.err (!%p1085_p10)
}
 0x4ed   :  { %673 = dma.vmem_to_hbm [thread:$0]  %s671_s14, 128, %s1477_s13, [#allocation4]  }
 0x4ee   :  { %1103 = dma.done.wait [#allocation4], 128  }
 0x4ef   :  { %1104 = vsyncadd [#allocation4], 4294967168 }
 0x4f0   :  { %677 = vsyncpa [#allocation3], 1 }
 0x4f1   :  { %678 = vsyncpa [#allocation6], 1 }
 0x4f2   :  { %679 = vsyncpa [#allocation9], 1 }
 0x4f3   :  { %680 = vsyncpa [#allocation4], 1 }

</bundles_post_ra>
